<compile_context>
chip_gen: v7x
topology: tpu7x:2x2x1
jax: 0.10.0
libtpu: 0.0.40
codegen_flags: <defaults>
</compile_context>

<pallas_src>
import functools

import jax
import jax.numpy as jnp
from jax.experimental import pallas as pl
from jax.experimental.pallas import tpu as pltpu


# ---------------------------------------------------------------------------
# Kernels
# ---------------------------------------------------------------------------

def _conv3x3_relu_kernel(x_ref, w_ref, b_ref, o_ref, *, img_w, fuse_k):
    # x_ref: (1, 1, (TH+2)*W, 3*Cin) bf16  padded row-slab; lanes hold the 3 W-taps
    # w_ref: (9*Cin, TN) bf16  if fuse_k else (3, 3*Cin, TN) bf16   (rows: kh,kw,cin)
    # b_ref: (1, TN) f32
    # o_ref: (1, TH*W, TN) f32
    m = o_ref.shape[1]                                   # TH * W output pixels
    # H-direction taps: a +kh row shift is a contiguous offset of kh*W in the
    # flattened slab, so each tap is a plain static slice (no in-kernel reshape).
    taps = [x_ref[0, 0, kh * img_w: kh * img_w + m, :] for kh in range(3)]
    if fuse_k:
        # Single matmul, K = 9*Cin: accumulation happens inside the MXU.
        patches = jnp.concatenate(taps, axis=-1)         # (M, 9*Cin) bf16
        acc = jnp.dot(patches, w_ref[...], preferred_element_type=jnp.float32)
    else:
        # Lane-unaligned 3*Cin (first layers): 3 matmuls with K = 3*Cin.
        acc = jnp.dot(taps[0], w_ref[0], preferred_element_type=jnp.float32)
        acc = acc + jnp.dot(taps[1], w_ref[1], preferred_element_type=jnp.float32)
        acc = acc + jnp.dot(taps[2], w_ref[2], preferred_element_type=jnp.float32)
    acc = acc + b_ref[...]                               # f32 bias
    o_ref[0] = jnp.maximum(acc, 0.0)                     # f32 ReLU epilogue


def _maxpool2x2_kernel(x_ref, o_ref):
    # x_ref: (1, TP, 2, Wo, 2*C) f32   (free row-major reshape of NHWC)
    # o_ref: (1, TP, Wo, C)    f32
    c = o_ref.shape[3]
    v = jnp.maximum(x_ref[0, :, 0, :, :], x_ref[0, :, 1, :, :])   # vertical max
    o_ref[0] = jnp.maximum(v[:, :, :c], v[:, :, c:])              # horizontal max


# ---------------------------------------------------------------------------
# Tiling helpers
# ---------------------------------------------------------------------------

def _pick_row_tile(h, w, target=64):
    """Largest divisor TH of h with TH<=target and TH*w sublane-aligned (or TH=h)."""
    if h <= target:
        return h
    for th in range(target, 0, -1):
        if h % th == 0 and (th * w) % 8 == 0:
            return th
    return h


def _pick_pool_tile(ho, target=128):
    if ho <= target:
        return ho
    for tp in range(target, 0, -1):
        if ho % tp == 0:
            return tp
    return ho


# ---------------------------------------------------------------------------
# Wrappers
# ---------------------------------------------------------------------------

def conv3x3_relu(x, w, b):
    """x: (N,H,W,Cin) f32; w: (Cout,Cin,3,3) PyTorch layout; b: (Cout,) -> (N,H,W,Cout) f32."""
    n, h, wd, cin = x.shape
    cout = w.shape[0]

    # bf16 activations for the MXU; zero-pad H and W by 1 ('same' conv).
    xp = jnp.pad(x.astype(jnp.bfloat16), ((0, 0), (1, 1), (1, 1), (0, 0)))
    # Fold the 3 W-direction taps onto the lane axis: (N, H+2, W, 3*Cin).
    xw = jnp.concatenate([xp[:, :, kw:kw + wd, :] for kw in range(3)], axis=-1)

    th = _pick_row_tile(h, wd)
    n_r = h // th
    # Row tiles with a 1-row halo, rows flattened so the kernel only needs
    # contiguous slices. (n_r==1 at small shapes -> no duplication at all.)
    tiles = [xw[:, r * th: r * th + th + 2] for r in range(n_r)]
    xt = jnp.stack(tiles, axis=1).reshape(n, n_r, (th + 2) * wd, 3 * cin)

    # Weight rows ordered (kh, kw, cin) to match the kernel's K layout.
    wk = jnp.transpose(w, (2, 3, 1, 0)).reshape(9 * cin, cout).astype(jnp.bfloat16)
    b2 = b.reshape(1, cout).astype(jnp.float32)

    tn = cout if cout <= 256 else 256
    n_j = cout // tn

    fuse_k = (3 * cin) % 128 == 0
    if fuse_k:
        w_arg = wk
        w_spec = pl.BlockSpec((9 * cin, tn), lambda i, r, j: (0, j))
    else:
        # 3-tap weight layout so the kernel indexes the leading dim (no
        # unaligned sublane slicing). TODO(synk): lane-pad Cin=3 first layer.
        w_arg = wk.reshape(3, 3 * cin, cout)
        w_spec = pl.BlockSpec((3, 3 * cin, tn), lambda i, r, j: (0, 0, j))

    kernel = functools.partial(_conv3x3_relu_kernel, img_w=wd, fuse_k=fuse_k)

    out = pl.pallas_call(
        kernel,
        out_shape=jax.ShapeDtypeStruct((n, h * wd, cout), jnp.float32),
        grid=(n, n_r, n_j),     # Cout fastest: input slab reused without re-DMA
        in_specs=[
            pl.BlockSpec((1, 1, (th + 2) * wd, 3 * cin), lambda i, r, j: (i, r, 0, 0)),
            w_spec,
            pl.BlockSpec((1, tn), lambda i, r, j: (0, j)),
        ],
        out_specs=pl.BlockSpec((1, th * wd, tn), lambda i, r, j: (i, r, j)),
        compiler_params=pltpu.CompilerParams(
            dimension_semantics=("parallel", "parallel", "parallel"),
            vmem_limit_bytes=48 * 1024 * 1024,   # v7x-safe (64 MiB VMEM per TC)
        ),
    )(xt, w_arg, b2)
    return out.reshape(n, h, wd, cout)


def maxpool2x2(x):
    """x: (N,H,W,C) f32 -> (N,H//2,W//2,C), kernel=2 stride=2 (nn.MaxPool2d(2,2))."""
    # TODO(synk): fuse the pool into the preceding conv's epilogue to skip one
    # full HBM round trip of the largest activations.
    n, h, w, c = x.shape
    ho, wo = h // 2, w // 2
    # Pure row-major split/merge reshape (no transpose, no data movement in XLA).
    xr = x.reshape(n, ho, 2, wo, 2 * c)

    tp = _pick_pool_tile(ho)
    n_r = ho // tp

    out = pl.pallas_call(
        _maxpool2x2_kernel,
        out_shape=jax.ShapeDtypeStruct((n, ho, wo, c), jnp.float32),
        grid=(n, n_r),
        in_specs=[pl.BlockSpec((1, tp, 2, wo, 2 * c), lambda i, r: (i, r, 0, 0, 0))],
        out_specs=pl.BlockSpec((1, tp, wo, c), lambda i, r: (i, r, 0, 0)),
        compiler_params=pltpu.CompilerParams(
            dimension_semantics=("parallel", "parallel"),
            vmem_limit_bytes=48 * 1024 * 1024,
        ),
    )(xr)
    return out


# ---------------------------------------------------------------------------
# VGG16 features[:23]
# ---------------------------------------------------------------------------

# (Cin, Cout) per conv, 'M' = MaxPool2d(2,2); matches torchvision vgg16.features[:23]
_VGG16_CFG = [(3, 64), (64, 64), 'M',
              (64, 128), (128, 128), 'M',
              (128, 256), (256, 256), (256, 256), 'M',
              (256, 512), (512, 512), (512, 512)]


def init_vgg16_params(key):
    # TODO(synk): pretrained VGG16_Weights.DEFAULT cannot be loaded here; use
    # deterministic He-init random parameters with identical shapes instead.
    params = []
    for item in _VGG16_CFG:
        if item == 'M':
            params.append('M')
            continue
        cin, cout = item
        key, kw, kb = jax.random.split(key, 3)
        fan_in = cin * 9
        w = jax.random.normal(kw, (cout, cin, 3, 3), jnp.float32) * jnp.sqrt(2.0 / fan_in)
        b = jax.random.normal(kb, (cout,), jnp.float32) * 0.01
        params.append((w, b))
    return params


def vgg16_forward(x_nchw, params):
    """Replicates Vgg16.forward: returns [relu1_2, relu2_2, relu3_3, relu4_3] in NCHW."""
    x = jnp.transpose(x_nchw, (0, 2, 3, 1)).astype(jnp.float32)  # NCHW -> NHWC
    results = []
    conv_count = 0
    collect_after_conv = {2, 4, 7, 10}  # == torch features indices {3, 8, 15, 22}
    for item in params:
        if item == 'M':
            x = maxpool2x2(x)
        else:
            w, b = item
            x = conv3x3_relu(x, w, b)   # Conv2d(3x3, pad=1) + ReLU fused
            conv_count += 1
            if conv_count in collect_after_conv:
                results.append(jnp.transpose(x, (0, 3, 1, 2)))  # back to NCHW
    return results


if __name__ == "__main__":
    key = jax.random.PRNGKey(0)
    kx, kp = jax.random.split(key)

    # Small deterministic NCHW input, 3 channels as VGG expects.
    x = jax.random.normal(kx, (2, 3, 16, 16), jnp.float32)
    params = init_vgg16_params(kp)

    outs = vgg16_forward(x, params)
    outs = [jax.block_until_ready(o) for o in outs]

    expected = [(2, 64, 16, 16), (2, 128, 8, 8), (2, 256, 4, 4), (2, 512, 2, 2)]
    assert [tuple(o.shape) for o in outs] == expected, [tuple(o.shape) for o in outs]
    assert all(bool(jnp.all(jnp.isfinite(o))) for o in outs)

    print("KERNEL_OK")
</pallas_src>

<mosaic_0001>
module attributes {stable_mosaic.version = 11 : i64} {
  func.func @_conv3x3_relu_kernel(%arg0: i32, %arg1: i32, %arg2: i32, %arg3: memref<1x1x288x9xbf16, #tpu.memory_space<vmem>>, %arg4: memref<3x9x64xbf16, #tpu.memory_space<vmem>>, %arg5: memref<1x64xf32, #tpu.memory_space<vmem>>, %arg6: memref<1x256x64xf32, #tpu.memory_space<vmem>>) attributes {dimension_semantics = [#tpu.dimension_semantics<parallel>, #tpu.dimension_semantics<parallel>, #tpu.dimension_semantics<parallel>], iteration_bounds = array<i64: 2, 1, 1>, scalar_prefetch = 0 : i64, scratch_operands = 0 : i64, tpu.core_type = #tpu.core_type<tc>, window_params = [{transform_indices = @transform_0, window_bounds = array<i64: 1, 1, 288, 9>}, {transform_indices = @transform_1, window_bounds = array<i64: 3, 9, 64>}, {transform_indices = @transform_2, window_bounds = array<i64: 1, 64>}, {transform_indices = @transform_3, window_bounds = array<i64: 1, 256, 64>}]} {
    %c0 = arith.constant 0 : index
    %c0_0 = arith.constant 0 : index
    %c0_1 = arith.constant 0 : index
    %c0_2 = arith.constant 0 : index
    %0 = vector.load %arg3[%c0, %c0_0, %c0_1, %c0_2] : memref<1x1x288x9xbf16, #tpu.memory_space<vmem>>, vector<1x1x256x9xbf16>
    %1 = vector.shape_cast %0 : vector<1x1x256x9xbf16> to vector<256x9xbf16>
    %c0_3 = arith.constant 0 : index
    %c0_4 = arith.constant 0 : index
    %c16 = arith.constant 16 : index
    %c0_5 = arith.constant 0 : index
    %2 = vector.load %arg3[%c0_3, %c0_4, %c16, %c0_5] : memref<1x1x288x9xbf16, #tpu.memory_space<vmem>>, vector<1x1x256x9xbf16>
    %3 = vector.shape_cast %2 : vector<1x1x256x9xbf16> to vector<256x9xbf16>
    %c0_6 = arith.constant 0 : index
    %c0_7 = arith.constant 0 : index
    %c32 = arith.constant 32 : index
    %c0_8 = arith.constant 0 : index
    %4 = vector.load %arg3[%c0_6, %c0_7, %c32, %c0_8] : memref<1x1x288x9xbf16, #tpu.memory_space<vmem>>, vector<1x1x256x9xbf16>
    %5 = vector.shape_cast %4 : vector<1x1x256x9xbf16> to vector<256x9xbf16>
    %c0_9 = arith.constant 0 : index
    %c0_10 = arith.constant 0 : index
    %c0_11 = arith.constant 0 : index
    %6 = vector.load %arg4[%c0_9, %c0_10, %c0_11] : memref<3x9x64xbf16, #tpu.memory_space<vmem>>, vector<1x9x64xbf16>
    %7 = vector.shape_cast %6 : vector<1x9x64xbf16> to vector<9x64xbf16>
    %cst = arith.constant dense<0.000000e+00> : vector<256x64xf32>
    %8 = tpu.matmul %1, %7, %cst {dimension_numbers = #tpu.dot_dimension_numbers<[1], [0], [0], [1], [0, 0, 1, 1], [], []>} : vector<256x9xbf16>, vector<9x64xbf16>, vector<256x64xf32> -> vector<256x64xf32>
    %c1 = arith.constant 1 : index
    %c0_12 = arith.constant 0 : index
    %c0_13 = arith.constant 0 : index
    %9 = vector.load %arg4[%c1, %c0_12, %c0_13] : memref<3x9x64xbf16, #tpu.memory_space<vmem>>, vector<1x9x64xbf16>
    %10 = vector.shape_cast %9 : vector<1x9x64xbf16> to vector<9x64xbf16>
    %cst_14 = arith.constant dense<0.000000e+00> : vector<256x64xf32>
    %11 = tpu.matmul %3, %10, %cst_14 {dimension_numbers = #tpu.dot_dimension_numbers<[1], [0], [0], [1], [0, 0, 1, 1], [], []>} : vector<256x9xbf16>, vector<9x64xbf16>, vector<256x64xf32> -> vector<256x64xf32>
    %12 = arith.addf %8, %11 : vector<256x64xf32>
    %c2 = arith.constant 2 : index
    %c0_15 = arith.constant 0 : index
    %c0_16 = arith.constant 0 : index
    %13 = vector.load %arg4[%c2, %c0_15, %c0_16] : memref<3x9x64xbf16, #tpu.memory_space<vmem>>, vector<1x9x64xbf16>
    %14 = vector.shape_cast %13 : vector<1x9x64xbf16> to vector<9x64xbf16>
    %cst_17 = arith.constant dense<0.000000e+00> : vector<256x64xf32>
    %15 = tpu.matmul %5, %14, %cst_17 {dimension_numbers = #tpu.dot_dimension_numbers<[1], [0], [0], [1], [0, 0, 1, 1], [], []>} : vector<256x9xbf16>, vector<9x64xbf16>, vector<256x64xf32> -> vector<256x64xf32>
    %16 = arith.addf %12, %15 : vector<256x64xf32>
    %c0_18 = arith.constant 0 : index
    %c0_19 = arith.constant 0 : index
    %17 = vector.load %arg5[%c0_18, %c0_19] : memref<1x64xf32, #tpu.memory_space<vmem>>, vector<1x64xf32>
    %18 = vector.broadcast %17 : vector<1x64xf32> to vector<256x64xf32>
    %19 = arith.addf %16, %18 : vector<256x64xf32>
    %cst_20 = arith.constant 0.000000e+00 : f32
    %20 = vector.broadcast %cst_20 : f32 to vector<256x64xf32>
    %21 = arith.maximumf %19, %20 : vector<256x64xf32>
    %c0_21 = arith.constant 0 : index
    %c0_22 = arith.constant 0 : index
    %c0_23 = arith.constant 0 : index
    %22 = vector.load %arg6[%c0_21, %c0_22, %c0_23] : memref<1x256x64xf32, #tpu.memory_space<vmem>>, vector<1x256x64xf32>
    %23 = vector.shape_cast %22 : vector<1x256x64xf32> to vector<256x64xf32>
    %24 = vector.shape_cast %21 : vector<256x64xf32> to vector<1x256x64xf32>
    tpu.vector_store %arg6[%c0_21, %c0_22, %c0_23], %24 {strides = array<i32>} : memref<1x256x64xf32, #tpu.memory_space<vmem>>, vector<1x256x64xf32>,
    return
  }
  func.func @transform_0(%arg0: i32, %arg1: i32, %arg2: i32) -> (i32, i32, i32, i32) {
    %c0_i32 = arith.constant 0 : i32
    %c0_i32_0 = arith.constant 0 : i32
    %c0_i32_1 = arith.constant 0 : i32
    return %arg0, %arg1, %c0_i32, %c0_i32_0 : i32, i32, i32, i32
  }
  func.func @transform_1(%arg0: i32, %arg1: i32, %arg2: i32) -> (i32, i32, i32) {
    %c0_i32 = arith.constant 0 : i32
    %c0_i32_0 = arith.constant 0 : i32
    %c0_i32_1 = arith.constant 0 : i32
    return %c0_i32, %c0_i32_0, %arg2 : i32, i32, i32
  }
  func.func @transform_2(%arg0: i32, %arg1: i32, %arg2: i32) -> (i32, i32) {
    %c0_i32 = arith.constant 0 : i32
    %c0_i32_0 = arith.constant 0 : i32
    return %c0_i32, %arg2 : i32, i32
  }
  func.func @transform_3(%arg0: i32, %arg1: i32, %arg2: i32) -> (i32, i32, i32) {
    %c0_i32 = arith.constant 0 : i32
    return %arg0, %arg1, %arg2 : i32, i32, i32
  }
}

</mosaic_0001>

<bundles_post_ra>
// kernel: tpu_custom_call.1
= control target key start
LH: loop header
LB: loop body
LE: loop exit
PB: predicated region body
PF: predicated region fallthrough
CT: control target
= control target key end

     0   :  { %s1619_s12 = smov 0   ;;  %s1621_s13 = smov 0   ;;  %s1848_s0 = inlined_call_operand.vmem [shape: bf16[2,1,288,9], index: 0, kind: input, shape index: {}]   ;;  %s1849_s1 = inlined_call_operand.vmem [shape: bf16[3,9,64], index: 1, kind: input, shape index: {}]   ;;  %s1850_s2 = inlined_call_operand.vmem [shape: f32[1,64], index: 2, kind: input, shape index: {}]   ;;  %s1851_s3 = inlined_call_operand.vmem [shape: f32[2,256,64], index: 3, kind: output, shape index: {}]  }
   0x1   :  { %s1623_s14 = smov 0  }
   0x2 LB: > { %s32_s15 = sadd.s32 1, %s1592_s13  ;;  %p1227_p0 = scmp.ge.s32.totalorder %s1596_s14, 1  ;;  %s1596_s14 = sphi %s1623_s14, %s13_s14   ;;  %s1592_s13 = sphi %s1621_s13, %s1853_s13   ;;  %s1588_s12 = sphi %s1619_s12, %s1852_s12  }
   0x3   : > { %p34_p1 = scmp.ge.s32.totalorder %s32_s15, 2  ;;  %p183_p2 = scmp.lt.s32.totalorder %s1596_s14, 3 }
   0x5   : > { %s1855_s15 = smov (%p34_p1, %s32_s15), 0  ;;  %p184_p3 = pnand %p1227_p0, %p183_p2 }
   0x6   : > { %v1553_v0 = vld [vmem:[%s1849_s1 + $0x8] sm:$0x1f] (!%p184_p3)   ;;  %vm430_vm0 = vcmask (!%p184_p3), 1043456   ;;  %vm431_vm1 = vcmask (!%p184_p3), 1044480   ;;  %v1554_v1 = vld [vmem:[%s1849_s1] sm:$0x1f] (!%p184_p3)  }
   0x7   : > { %187 = sbr.rel (%p184_p3) target bundleno = 330 (0x14a), region = 32  ;;  %p225_p4 = scmp.lt.s32.totalorder (!%p184_p3), %s1588_s12, 1  ;;  %v1598_v2 = vmov (!%p184_p3), 65535   ;;  %v1557_v5 = vld [vmem:[%s1849_s1 + $0x10] sm:$0x1f] (!%p184_p3)   ;;  %vm381_vm2 = vcmask (!%p184_p3), 72704  }
   0x8   : > { %v432_v3 = vsel (!%p184_p3), %vm430_vm0, 4294967295, %v1598_v2  ;;  %v1731_v44 = vld [vmem:[%s1850_s2] ss:$0 sm:$0xff] (!%p184_p3)  ;;  %vm1058_vm3 = vcmask (!%p184_p3), 523264  }
   0x9   : > { %v433_v4 = vsel (!%p184_p3), %vm431_vm1, %v432_v3, 0 }
   0xa   : > { %v435_v6 = vand.u32 (!%p184_p3), %v1553_v0, %v433_v4  ;;  %v612_v7 = vand.u32 (!%p184_p3), %v1554_v1, %v433_v4  ;;  %v792_v8 = vand.u32 (!%p184_p3), %v1557_v5, %v433_v4 }
   0xc   : > { %1359 = vmatprep.subr.bf16.mxu1 (!%p184_p3), %v435_v6  ;;  %1393 = vmatprep.subr.bf16.mxu0 (!%p184_p3), %v612_v7 }
   0xd   : > { %1360 = vmatpush3.bf16.msra.mxu1 (!%p184_p3), %v435_v6  ;;  %1394 = vmatpush3.bf16.msra.mxu0 (!%p184_p3), %v612_v7 }
   0xe   : > { %s1857_s12 = smov (!%p225_p4, %s1588_s12), 1  ;;  %1461 = vmatprep.subr.bf16.mxu1 %v612_v7  ;;  %1427 = vmatprep.subr.bf16.mxu0 %v792_v8 }
   0xf   : > { %s1527_s22 = smul.u32 144, %s1857_s12  ;;  %s1307_s28 = sshll.u32 %s1857_s12, 8 }
  0x10   : > { %s1738_s4 = scalar_lea.vmem %s1851_s3, %s1307_s28 }
  0x11   : > { %s1652_s25 = scalar_lea.vmem %s1848_s0, %s1527_s22 }
  0x12   : > { %v1555_v9 = vld [vmem:[%s1652_s25 + $0x8] sm:$0xff]   ;;  %v1556_v10 = vld [vmem:[%s1652_s25] sm:$0xff]   ;;  %v1558_v11 = vld [vmem:[%s1652_s25 + $0x10] sm:$0xff]  }
  0x13   : > { %1361 = vmatprep.mubr.msk.bf16.mxu1 %vm381_vm2, %v1555_v9  ;;  %1395 = vmatprep.mubr.msk.bf16.mxu0 %vm381_vm2, %v1556_v10  ;;  %v1559_v12 = vld [vmem:[%s1652_s25 + $0x18] sm:$0xff]   ;;  %v1560_v13 = vld [vmem:[%s1652_s25 + $0x20] sm:$0xff]   ;;  %v1561_v14 = vld [vmem:[%s1652_s25 + $0x28] sm:$0xff]  }
  0x14   : > { %1362 = vmatmul.mubr.msk.bf16.vlgmr.msra.gmra.mrb[0].mxu1 %vm381_vm2, %v1558_v11  ;;  %1396 = vmatmul.mubr.msk.bf16.vlgmr.msra.gmra.mrb[0].mxu0 %vm381_vm2, %v1555_v9  ;;  %v1562_v15 = vld [vmem:[%s1652_s25 + $0x30] sm:$0xff]   ;;  %v1563_v16 = vld [vmem:[%s1652_s25 + $0x38] sm:$0xff]   ;;  %v1564_v17 = vld [vmem:[%s1652_s25 + $0x40] sm:$0xff]  }
  0x15   : > { %1462 = vmatpush3.bf16.msra.mxu1 %v612_v7  ;;  %1428 = vmatpush3.bf16.msra.mxu0 %v792_v8  ;;  %v1565_v18 = vld [vmem:[%s1652_s25 + $0x48] sm:$0xff]   ;;  %v1566_v19 = vld [vmem:[%s1652_s25 + $0x50] sm:$0xff]   ;;  %v1567_v20 = vld [vmem:[%s1652_s25 + $0x58] sm:$0xff]  }
  0x16   : > { %1365 = vmatprep.mubr.msk.bf16.mxu1 %vm381_vm2, %v1559_v12  ;;  %1399 = vmatprep.mubr.msk.bf16.mxu0 %vm381_vm2, %v1558_v11  ;;  %v1568_v21 = vld [vmem:[%s1652_s25 + $0x60] sm:$0xff]   ;;  %v1569_v22 = vld [vmem:[%s1652_s25 + $0x68] sm:$0xff]   ;;  %v1570_v23 = vld [vmem:[%s1652_s25 + $0x70] sm:$0xff]  }
  0x17   : > { %v1571_v24 = vld [vmem:[%s1652_s25 + $0x78] sm:$0xff]   ;;  %v1572_v25 = vld [vmem:[%s1652_s25 + $0x80] sm:$0xff]   ;;  %v1573_v26 = vld [vmem:[%s1652_s25 + $0x88] sm:$0xff]  }
  0x1c   : > { %1366 = vmatmul.mubr.msk.bf16.gmra.mrb[4].mxu1 %vm381_vm2, %v1560_v13  ;;  %1400 = vmatmul.mubr.msk.bf16.gmra.mrb[4].mxu0 %vm381_vm2, %v1559_v12 }
  0x1d   : > { %1369 = vmatprep.mubr.msk.bf16.mxu1 %vm381_vm2, %v1561_v14  ;;  %1403 = vmatprep.mubr.msk.bf16.mxu0 %vm381_vm2, %v1560_v13 }
  0x24   : > { %1370 = vmatmul.mubr.msk.bf16.gmra.mrb[8].mxu1 %vm381_vm2, %v1562_v15  ;;  %1404 = vmatmul.mubr.msk.bf16.gmra.mrb[8].mxu0 %vm381_vm2, %v1561_v14 }
  0x25   : > { %1373 = vmatprep.mubr.msk.bf16.mxu1 %vm381_vm2, %v1563_v16  ;;  %1407 = vmatprep.mubr.msk.bf16.mxu0 %vm381_vm2, %v1562_v15 }
  0x2c   : > { %1374 = vmatmul.mubr.msk.bf16.gmra.mrb[12].mxu1 %vm381_vm2, %v1564_v17  ;;  %1408 = vmatmul.mubr.msk.bf16.gmra.mrb[12].mxu0 %vm381_vm2, %v1563_v16 }
  0x2d   : > { %1377 = vmatprep.mubr.msk.bf16.mxu1 %vm381_vm2, %v1565_v18  ;;  %1429 = vmatprep.mubr.msk.bf16.mxu0 %vm381_vm2, %v1558_v11 }
  0x34   : > { %1378 = vmatmul.mubr.msk.bf16.gmra.mrb[16].mxu1 %vm381_vm2, %v1566_v19  ;;  %1430 = vmatmul.mubr.msk.bf16.vlgmr.msra.gmra.mrb[0].mxu0 %vm381_vm2, %v1559_v12 }
  0x35   : > { %1381 = vmatprep.mubr.msk.bf16.mxu1 %vm381_vm2, %v1567_v20  ;;  %1433 = vmatprep.mubr.msk.bf16.mxu0 %vm381_vm2, %v1560_v13 }
  0x3c   : > { %1382 = vmatmul.mubr.msk.bf16.gmra.mrb[20].mxu1 %vm381_vm2, %v1568_v21  ;;  %1434 = vmatmul.mubr.msk.bf16.gmra.mrb[4].mxu0 %vm381_vm2, %v1561_v14 }
  0x3d   : > { %1385 = vmatprep.mubr.msk.bf16.mxu1 %vm381_vm2, %v1569_v22  ;;  %1437 = vmatprep.mubr.msk.bf16.mxu0 %vm381_vm2, %v1562_v15 }
  0x44   : > { %1386 = vmatmul.mubr.msk.bf16.gmra.mrb[24].mxu1 %vm381_vm2, %v1570_v23  ;;  %1438 = vmatmul.mubr.msk.bf16.gmra.mrb[8].mxu0 %vm381_vm2, %v1563_v16 }
  0x45   : > { %1389 = vmatprep.mubr.msk.bf16.mxu1 %vm381_vm2, %v1571_v24  ;;  %1441 = vmatprep.mubr.msk.bf16.mxu0 %vm381_vm2, %v1564_v17 }
  0x4c   : > { %1390 = vmatmul.mubr.msk.bf16.gmra.mrb[28].mxu1 %vm381_vm2, %v1572_v25  ;;  %1442 = vmatmul.mubr.msk.bf16.gmra.mrb[12].mxu0 %vm381_vm2, %v1565_v18 }
  0x4d   : > { %1411 = vmatprep.mubr.msk.bf16.mxu1 %vm381_vm2, %v1564_v17  ;;  %1445 = vmatprep.mubr.msk.bf16.mxu0 %vm381_vm2, %v1566_v19 }
  0x54   : > { %1412 = vmatmul.mubr.msk.bf16.vlgmr.msra.gmra.mrb[16].mxu1 %vm381_vm2, %v1565_v18  ;;  %1446 = vmatmul.mubr.msk.bf16.gmra.mrb[16].mxu0 %vm381_vm2, %v1567_v20 }
  0x55   : > { %1415 = vmatprep.mubr.msk.bf16.mxu1 %vm381_vm2, %v1566_v19  ;;  %1449 = vmatprep.mubr.msk.bf16.mxu0 %vm381_vm2, %v1568_v21 }
  0x5c   : > { %1416 = vmatmul.mubr.msk.bf16.gmra.mrb[20].mxu1 %vm381_vm2, %v1567_v20  ;;  %1450 = vmatmul.mubr.msk.bf16.gmra.mrb[20].mxu0 %vm381_vm2, %v1569_v22 }
  0x5d   : > { %1419 = vmatprep.mubr.msk.bf16.mxu1 %vm381_vm2, %v1568_v21  ;;  %1453 = vmatprep.mubr.msk.bf16.mxu0 %vm381_vm2, %v1570_v23 }
  0x64   : > { %1420 = vmatmul.mubr.msk.bf16.gmra.mrb[24].mxu1 %vm381_vm2, %v1569_v22  ;;  %1454 = vmatmul.mubr.msk.bf16.gmra.mrb[24].mxu0 %vm381_vm2, %v1571_v24 }
  0x65   : > { %1423 = vmatprep.mubr.msk.bf16.mxu1 %vm381_vm2, %v1570_v23  ;;  %1457 = vmatprep.mubr.msk.bf16.mxu0 %vm381_vm2, %v1572_v25 }
  0x6c   : > { %1424 = vmatmul.mubr.msk.bf16.gmra.mrb[28].mxu1 %vm381_vm2, %v1571_v24  ;;  %1458 = vmatmul.mubr.msk.bf16.gmra.mrb[28].mxu0 %vm381_vm2, %v1573_v26 }
  0xe7   : > { %v1363_v27 = vpop.f32.mrb[0].mxu1 }
  0xe8   : > { %v471_v28 = vpop.f32.mrb[1].mxu1 }
  0xe9   : > { %v1364_v29 = vpop.f32.mrb[2].mxu1 }
  0xea   : > { %v474_v30 = vpop.f32.mrb[3].mxu1 }
  0xef   : > { %v1367_v31 = vpop.f32.mrb[4].mxu1 }
  0xf0   : > { %v487_v32 = vpop.f32.mrb[5].mxu1 }
  0xf1   : > { %v1368_v33 = vpop.f32.mrb[6].mxu1 }
  0xf2   : > { %v490_v34 = vpop.f32.mrb[7].mxu1 }
  0xf7   : > { %v1371_v35 = vpop.f32.mrb[8].mxu1 }
  0xf8   : > { %v503_v36 = vpop.f32.mrb[9].mxu1 }
  0xf9   : > { %v1372_v37 = vpop.f32.mrb[10].mxu1 }
  0xfa   : > { %v506_v38 = vpop.f32.mrb[11].mxu1 }
  0xff   : > { %v1720_v39 = vpop.f32.mrb[12].mxu1 }
 0x100   : > { %v1722_v40 = vpop.f32.mrb[13].mxu1 }
 0x101   : > { %v1724_v41 = vpop.f32.mrb[14].mxu1 }
 0x102   : > { %v1726_v42 = vpop.f32.mrb[15].mxu1 }
 0x107   : > { %v1431_v43 = vpop.f32.mrb[0].mxu0 }
 0x108   : > { %v1463_v45 = vadd.f32 %v1431_v43, %v1363_v27  ;;  %v828_v46 = vpop.f32.mrb[1].mxu0 }
 0x109   : > { %v1464_v47 = vadd.f32 %v828_v46, %v471_v28  ;;  %v1432_v48 = vpop.f32.mrb[2].mxu0 }
 0x10a   : > { %v996_v49 = vadd.f32 %v1463_v45, %v1731_v44  ;;  %v1465_v50 = vadd.f32 %v1432_v48, %v1364_v29  ;;  %v831_v51 = vpop.f32.mrb[3].mxu0 }
 0x10b   : > { %v994_v52 = vadd.f32 %v1464_v47, %v1731_v44  ;;  %v1466_v53 = vadd.f32 %v831_v51, %v474_v30 }
 0x10c   : > { %v1028_v54 = vmax.f32 %v996_v49, 0.0  ;;  %v997_v55 = vadd.f32 %v1465_v50, %v1731_v44 }
 0x10d   : > { %v1026_v56 = vmax.f32 %v994_v52, 0.0  ;;  %v995_v57 = vadd.f32 %v1466_v53, %v1731_v44 }
 0x10e   : > { %1061 = vst.msk [vmem:[%s1738_s4 + $0x10] sm:$0xff] %vm1058_vm3, %v1028_v54  ;;  %v1029_v58 = vmax.f32 %v997_v55, 0.0 }
 0x10f   : > { %1059 = vst.msk [vmem:[%s1738_s4] sm:$0xff] %vm1058_vm3, %v1026_v56  ;;  %v1027_v59 = vmax.f32 %v995_v57, 0.0  ;;  %v1435_v60 = vpop.f32.mrb[4].mxu0 }
 0x110   : > { %1062 = vst.msk [vmem:[%s1738_s4 + $0x18] sm:$0xff] %vm1058_vm3, %v1029_v58  ;;  %v1467_v61 = vadd.f32 %v1435_v60, %v1367_v31  ;;  %v844_v62 = vpop.f32.mrb[5].mxu0 }
 0x111   : > { %1060 = vst.msk [vmem:[%s1738_s4 + $0x8] sm:$0xff] %vm1058_vm3, %v1027_v59  ;;  %v1468_v63 = vadd.f32 %v844_v62, %v487_v32  ;;  %v1436_v0 = vpop.f32.mrb[6].mxu0 }
 0x112   : > { %v1000_v1 = vadd.f32 %v1467_v61, %v1731_v44  ;;  %v1469_v2 = vadd.f32 %v1436_v0, %v1368_v33  ;;  %v847_v3 = vpop.f32.mrb[7].mxu0 }
 0x113   : > { %v998_v4 = vadd.f32 %v1468_v63, %v1731_v44  ;;  %v1470_v5 = vadd.f32 %v847_v3, %v490_v34 }
 0x114   : > { %v1032_v6 = vmax.f32 %v1000_v1, 0.0  ;;  %v1001_v7 = vadd.f32 %v1469_v2, %v1731_v44 }
 0x115   : > { %v1030_v8 = vmax.f32 %v998_v4, 0.0  ;;  %v999_v9 = vadd.f32 %v1470_v5, %v1731_v44 }
 0x116   : > { %1065 = vst.msk [vmem:[%s1738_s4 + $0x30] sm:$0xff] %vm1058_vm3, %v1032_v6  ;;  %v1033_v10 = vmax.f32 %v1001_v7, 0.0 }
 0x117   : > { %1063 = vst.msk [vmem:[%s1738_s4 + $0x20] sm:$0xff] %vm1058_vm3, %v1030_v8  ;;  %v1031_v11 = vmax.f32 %v999_v9, 0.0  ;;  %v1439_v12 = vpop.f32.mrb[8].mxu0 }
 0x118   : > { %1066 = vst.msk [vmem:[%s1738_s4 + $0x38] sm:$0xff] %vm1058_vm3, %v1033_v10  ;;  %v1471_v13 = vadd.f32 %v1439_v12, %v1371_v35  ;;  %v860_v14 = vpop.f32.mrb[9].mxu0 }
 0x119   : > { %1064 = vst.msk [vmem:[%s1738_s4 + $0x28] sm:$0xff] %vm1058_vm3, %v1031_v11  ;;  %v1472_v15 = vadd.f32 %v860_v14, %v503_v36  ;;  %v1440_v16 = vpop.f32.mrb[10].mxu0 }
 0x11a   : > { %v1004_v17 = vadd.f32 %v1471_v13, %v1731_v44  ;;  %v1473_v18 = vadd.f32 %v1440_v16, %v1372_v37  ;;  %v863_v19 = vpop.f32.mrb[11].mxu0 }
 0x11b   : > { %v1002_v20 = vadd.f32 %v1472_v15, %v1731_v44  ;;  %v1474_v21 = vadd.f32 %v863_v19, %v506_v38 }
 0x11c   : > { %v1036_v22 = vmax.f32 %v1004_v17, 0.0  ;;  %v1005_v23 = vadd.f32 %v1473_v18, %v1731_v44 }
 0x11d   : > { %v1034_v24 = vmax.f32 %v1002_v20, 0.0  ;;  %v1003_v25 = vadd.f32 %v1474_v21, %v1731_v44 }
 0x11e   : > { %1069 = vst.msk [vmem:[%s1738_s4 + $0x50] sm:$0xff] %vm1058_vm3, %v1036_v22  ;;  %v1037_v26 = vmax.f32 %v1005_v23, 0.0 }
 0x11f   : > { %1067 = vst.msk [vmem:[%s1738_s4 + $0x40] sm:$0xff] %vm1058_vm3, %v1034_v24  ;;  %v1035_v27 = vmax.f32 %v1003_v25, 0.0  ;;  %v1443_v28 = vpop.f32.mrb[12].mxu0 }
 0x120   : > { %1070 = vst.msk [vmem:[%s1738_s4 + $0x58] sm:$0xff] %vm1058_vm3, %v1037_v26  ;;  %v1475_v29 = vadd.f32 %v1443_v28, %v1720_v39  ;;  %v876_v30 = vpop.f32.mrb[13].mxu0 }
 0x121   : > { %1068 = vst.msk [vmem:[%s1738_s4 + $0x48] sm:$0xff] %vm1058_vm3, %v1035_v27  ;;  %v1476_v31 = vadd.f32 %v876_v30, %v1722_v40  ;;  %v1444_v32 = vpop.f32.mrb[14].mxu0 }
 0x122   : > { %v1008_v33 = vadd.f32 %v1475_v29, %v1731_v44  ;;  %v1477_v34 = vadd.f32 %v1444_v32, %v1724_v41  ;;  %v879_v35 = vpop.f32.mrb[15].mxu0 }
 0x123   : > { %v1006_v36 = vadd.f32 %v1476_v31, %v1731_v44  ;;  %v1478_v37 = vadd.f32 %v879_v35, %v1726_v42 }
 0x124   : > { %v1040_v38 = vmax.f32 %v1008_v33, 0.0  ;;  %v1009_v39 = vadd.f32 %v1477_v34, %v1731_v44 }
 0x125   : > { %v1038_v43 = vmax.f32 %v1006_v36, 0.0  ;;  %v1007_v45 = vadd.f32 %v1478_v37, %v1731_v44 }
 0x126   : > { %1073 = vst.msk [vmem:[%s1738_s4 + $0x70] sm:$0xff] %vm1058_vm3, %v1040_v38  ;;  %v1041_v40 = vmax.f32 %v1009_v39, 0.0 }
 0x127   : > { %1071 = vst.msk [vmem:[%s1738_s4 + $0x60] sm:$0xff] %vm1058_vm3, %v1038_v43  ;;  %v1039_v46 = vmax.f32 %v1007_v45, 0.0  ;;  %v1413_v47 = vpop.f32.mrb[16].mxu1  ;;  %v1447_v41 = vpop.f32.mrb[16].mxu0 }
 0x128   : > { %1074 = vst.msk [vmem:[%s1738_s4 + $0x78] sm:$0xff] %vm1058_vm3, %v1041_v40  ;;  %v1479_v48 = vadd.f32 %v1447_v41, %v1413_v47  ;;  %v712_v49 = vpop.f32.mrb[17].mxu1  ;;  %v892_v42 = vpop.f32.mrb[17].mxu0 }
 0x129   : > { %1072 = vst.msk [vmem:[%s1738_s4 + $0x68] sm:$0xff] %vm1058_vm3, %v1039_v46  ;;  %v1480_v50 = vadd.f32 %v892_v42, %v712_v49  ;;  %v1414_v51 = vpop.f32.mrb[18].mxu1  ;;  %v1448_v52 = vpop.f32.mrb[18].mxu0 }
 0x12a   : > { %v1012_v53 = vadd.f32 %v1479_v48, %v1731_v44  ;;  %v1481_v54 = vadd.f32 %v1448_v52, %v1414_v51  ;;  %v715_v55 = vpop.f32.mrb[19].mxu1  ;;  %v895_v56 = vpop.f32.mrb[19].mxu0 }
 0x12b   : > { %v1010_v57 = vadd.f32 %v1480_v50, %v1731_v44  ;;  %v1482_v58 = vadd.f32 %v895_v56, %v715_v55 }
 0x12c   : > { %v1044_v59 = vmax.f32 %v1012_v53, 0.0  ;;  %v1013_v60 = vadd.f32 %v1481_v54, %v1731_v44 }
 0x12d   : > { %v1042_v61 = vmax.f32 %v1010_v57, 0.0  ;;  %v1011_v62 = vadd.f32 %v1482_v58, %v1731_v44 }
 0x12e   : > { %1077 = vst.msk [vmem:[%s1738_s4 + $0x90] sm:$0xff] %vm1058_vm3, %v1044_v59  ;;  %v1045_v63 = vmax.f32 %v1013_v60, 0.0 }
 0x12f   : > { %1075 = vst.msk [vmem:[%s1738_s4 + $0x80] sm:$0xff] %vm1058_vm3, %v1042_v61  ;;  %v1043_v0 = vmax.f32 %v1011_v62, 0.0  ;;  %v1417_v1 = vpop.f32.mrb[20].mxu1  ;;  %v1451_v2 = vpop.f32.mrb[20].mxu0 }
 0x130   : > { %1078 = vst.msk [vmem:[%s1738_s4 + $0x98] sm:$0xff] %vm1058_vm3, %v1045_v63  ;;  %v1483_v3 = vadd.f32 %v1451_v2, %v1417_v1  ;;  %v728_v4 = vpop.f32.mrb[21].mxu1  ;;  %v908_v5 = vpop.f32.mrb[21].mxu0 }
 0x131   : > { %1076 = vst.msk [vmem:[%s1738_s4 + $0x88] sm:$0xff] %vm1058_vm3, %v1043_v0  ;;  %v1484_v6 = vadd.f32 %v908_v5, %v728_v4  ;;  %v1418_v7 = vpop.f32.mrb[22].mxu1  ;;  %v1452_v8 = vpop.f32.mrb[22].mxu0 }
 0x132   : > { %v1016_v9 = vadd.f32 %v1483_v3, %v1731_v44  ;;  %v1485_v10 = vadd.f32 %v1452_v8, %v1418_v7  ;;  %v731_v11 = vpop.f32.mrb[23].mxu1  ;;  %v911_v12 = vpop.f32.mrb[23].mxu0 }
 0x133   : > { %v1014_v13 = vadd.f32 %v1484_v6, %v1731_v44  ;;  %v1486_v14 = vadd.f32 %v911_v12, %v731_v11 }
 0x134   : > { %v1048_v15 = vmax.f32 %v1016_v9, 0.0  ;;  %v1017_v16 = vadd.f32 %v1485_v10, %v1731_v44 }
 0x135   : > { %v1046_v17 = vmax.f32 %v1014_v13, 0.0  ;;  %v1015_v18 = vadd.f32 %v1486_v14, %v1731_v44 }
 0x136   : > { %1081 = vst.msk [vmem:[%s1738_s4 + $0xb0] sm:$0xff] %vm1058_vm3, %v1048_v15  ;;  %v1049_v19 = vmax.f32 %v1017_v16, 0.0 }
 0x137   : > { %1079 = vst.msk [vmem:[%s1738_s4 + $0xa0] sm:$0xff] %vm1058_vm3, %v1046_v17  ;;  %v1047_v20 = vmax.f32 %v1015_v18, 0.0  ;;  %v1421_v21 = vpop.f32.mrb[24].mxu1  ;;  %v1455_v22 = vpop.f32.mrb[24].mxu0 }
 0x138   : > { %1082 = vst.msk [vmem:[%s1738_s4 + $0xb8] sm:$0xff] %vm1058_vm3, %v1049_v19  ;;  %v1487_v23 = vadd.f32 %v1455_v22, %v1421_v21  ;;  %v744_v24 = vpop.f32.mrb[25].mxu1  ;;  %v924_v25 = vpop.f32.mrb[25].mxu0 }
 0x139   : > { %1080 = vst.msk [vmem:[%s1738_s4 + $0xa8] sm:$0xff] %vm1058_vm3, %v1047_v20  ;;  %v1488_v26 = vadd.f32 %v924_v25, %v744_v24  ;;  %v1422_v27 = vpop.f32.mrb[26].mxu1  ;;  %v1456_v28 = vpop.f32.mrb[26].mxu0 }
 0x13a   : > { %v1020_v29 = vadd.f32 %v1487_v23, %v1731_v44  ;;  %v1489_v30 = vadd.f32 %v1456_v28, %v1422_v27  ;;  %v747_v31 = vpop.f32.mrb[27].mxu1  ;;  %v927_v32 = vpop.f32.mrb[27].mxu0 }
 0x13b   : > { %v1018_v33 = vadd.f32 %v1488_v26, %v1731_v44  ;;  %v1490_v34 = vadd.f32 %v927_v32, %v747_v31 }
 0x13c   : > { %v1052_v35 = vmax.f32 %v1020_v29, 0.0  ;;  %v1021_v36 = vadd.f32 %v1489_v30, %v1731_v44 }
 0x13d   : > { %v1050_v37 = vmax.f32 %v1018_v33, 0.0  ;;  %v1019_v38 = vadd.f32 %v1490_v34, %v1731_v44 }
 0x13e   : > { %1085 = vst.msk [vmem:[%s1738_s4 + $0xd0] sm:$0xff] %vm1058_vm3, %v1052_v35  ;;  %v1053_v39 = vmax.f32 %v1021_v36, 0.0 }
 0x13f   : > { %1083 = vst.msk [vmem:[%s1738_s4 + $0xc0] sm:$0xff] %vm1058_vm3, %v1050_v37  ;;  %v1051_v43 = vmax.f32 %v1019_v38, 0.0  ;;  %v1425_v45 = vpop.f32.mrb[28].mxu1  ;;  %v1459_v40 = vpop.f32.mrb[28].mxu0 }
 0x140   : > { %1086 = vst.msk [vmem:[%s1738_s4 + $0xd8] sm:$0xff] %vm1058_vm3, %v1053_v39  ;;  %v1491_v46 = vadd.f32 %v1459_v40, %v1425_v45  ;;  %v760_v47 = vpop.f32.mrb[29].mxu1  ;;  %v940_v41 = vpop.f32.mrb[29].mxu0 }
 0x141   : > { %1084 = vst.msk [vmem:[%s1738_s4 + $0xc8] sm:$0xff] %vm1058_vm3, %v1051_v43  ;;  %v1492_v48 = vadd.f32 %v940_v41, %v760_v47  ;;  %v1426_v49 = vpop.f32.mrb[30].mxu1  ;;  %v1460_v42 = vpop.f32.mrb[30].mxu0 }
 0x142   : > { %v1024_v50 = vadd.f32 %v1491_v46, %v1731_v44  ;;  %v1493_v51 = vadd.f32 %v1460_v42, %v1426_v49  ;;  %v763_v52 = vpop.f32.mrb[31].mxu1  ;;  %v943_v53 = vpop.f32.mrb[31].mxu0 }
 0x143   : > { %v1022_v54 = vadd.f32 %v1492_v48, %v1731_v44  ;;  %v1494_v55 = vadd.f32 %v943_v53, %v763_v52 }
 0x144   : > { %v1056_v56 = vmax.f32 %v1024_v50, 0.0  ;;  %v1025_v57 = vadd.f32 %v1493_v51, %v1731_v44 }
 0x145   : > { %v1054_v58 = vmax.f32 %v1022_v54, 0.0  ;;  %v1023_v59 = vadd.f32 %v1494_v55, %v1731_v44 }
 0x146   : > { %1089 = vst.msk [vmem:[%s1738_s4 + $0xf0] sm:$0xff] %vm1058_vm3, %v1056_v56  ;;  %v1057_v60 = vmax.f32 %v1025_v57, 0.0 }
 0x147   : > { %1087 = vst.msk [vmem:[%s1738_s4 + $0xe0] sm:$0xff] %vm1058_vm3, %v1054_v58  ;;  %v1055_v61 = vmax.f32 %v1023_v59, 0.0 }
 0x148   : > { %1090 = vst.msk [vmem:[%s1738_s4 + $0xf8] sm:$0xff] %vm1058_vm3, %v1057_v60 }
 0x149   : > { %1088 = vst.msk [vmem:[%s1738_s4 + $0xe8] sm:$0xff] %vm1058_vm3, %v1055_v61 }
 0x14a PF: > { %s13_s14 = sadd.s32 1, %s1596_s14   ;;  %s1852_s12 = smov %s1592_s13 }
 0x14b   : > { %p10_p5 = scmp.ge.s32.totalorder %s13_s14, 4   ;;  %s1853_s13 = smov %s1855_s15 }
 0x14d   :  { %12 = sbr.rel (!%p10_p5) target bundleno = 2 (0x2), region = 70 }

</bundles_post_ra>
